<compile_context>
chip_gen: v6e
topology: v6e:2x2x1
jax: 0.10.0
libtpu: 0.0.40
codegen_flags: <defaults>
</compile_context>

<pallas_src>
import functools

import jax
import jax.numpy as jnp
from jax.experimental import pallas as pl
from jax.experimental.pallas import tpu as pltpu


def _transition_kernel(h_ref, a_ref,
                       w_prior_h_ref, w_prior_a_ref, b_prior_ref,
                       w_mean_ref, b_mean_ref,
                       w_std_ref, b_std_ref,
                       mean_ref, std_ref):
    # self.prior: Linear(h_dim + action_encode_dim -> h_dim) + ReLU,
    # with the concat fused away as a sum of two matmuls on the MXU.
    acc = jnp.dot(h_ref[...], w_prior_h_ref[...],
                  preferred_element_type=jnp.float32)
    acc = acc + jnp.dot(a_ref[...], w_prior_a_ref[...],
                        preferred_element_type=jnp.float32)
    prior_t = jnp.maximum(acc + b_prior_ref[...], 0.0)

    # self.prior_mean: Linear(h_dim -> z_dim)
    mean = jnp.dot(prior_t, w_mean_ref[...],
                   preferred_element_type=jnp.float32) + b_mean_ref[...]
    # self.prior_std: Linear(h_dim -> z_dim) + Softplus
    std_lin = jnp.dot(prior_t, w_std_ref[...],
                      preferred_element_type=jnp.float32) + b_std_ref[...]

    mean_ref[...] = mean.astype(mean_ref.dtype)
    std_ref[...] = jax.nn.softplus(std_lin).astype(std_ref.dtype)


@functools.partial(jax.jit, static_argnames=("tile_n",))
def vrnn_transition_pallas(h, encoded_action, params, tile_n=512):
    """h: [B, P, h_dim]; encoded_action: [B, P, action_encode_dim].

    Returns (prior_mean, prior_std), each [B, P, z_dim].
    (The rv.StateRandomVariable / MultivariateIndependentNormal wrapper is a
     distribution object with no Pallas equivalent; we return its arrays.)"""
    w_prior, b_prior = params["w_prior"], params["b_prior"]
    w_mean, b_mean = params["w_mean"], params["b_mean"]
    w_std, b_std = params["w_std"], params["b_std"]

    B, P, h_dim = h.shape
    a_dim = encoded_action.shape[2]
    z_dim = w_mean.shape[1]
    N = B * P

    # Flatten particles into rows (pure view, no HBM concat).
    h_flat = h.reshape(N, h_dim)
    a_flat = encoded_action.reshape(N, a_dim)

    # Pre-split the prior weight so the kernel never slices across lane tiles.
    w_prior_h = w_prior[:h_dim, :]
    w_prior_a = w_prior[h_dim:, :]

    # Clamp the row tile to the problem size; keep it a multiple of 8 sublanes.
    tile_n = int(min(tile_n, max(8, ((N + 7) // 8) * 8)))
    grid = (pl.cdiv(N, tile_n),)

    mean, std = pl.pallas_call(
        _transition_kernel,
        out_shape=(
            jax.ShapeDtypeStruct((N, z_dim), h.dtype),
            jax.ShapeDtypeStruct((N, z_dim), h.dtype),
        ),
        grid_spec=pltpu.PrefetchScalarGridSpec(
            num_scalar_prefetch=0,
            grid=grid,
            in_specs=[
                pl.BlockSpec((tile_n, h_dim), lambda i: (i, 0)),    # h rows
                pl.BlockSpec((tile_n, a_dim), lambda i: (i, 0)),    # action rows
                pl.BlockSpec((h_dim, h_dim), lambda i: (0, 0)),     # W_prior[:h_dim]
                pl.BlockSpec((a_dim, h_dim), lambda i: (0, 0)),     # W_prior[h_dim:]
                pl.BlockSpec((1, h_dim), lambda i: (0, 0)),         # b_prior
                pl.BlockSpec((h_dim, z_dim), lambda i: (0, 0)),     # W_mean
                pl.BlockSpec((1, z_dim), lambda i: (0, 0)),         # b_mean
                pl.BlockSpec((h_dim, z_dim), lambda i: (0, 0)),     # W_std
                pl.BlockSpec((1, z_dim), lambda i: (0, 0)),         # b_std
            ],
            out_specs=[
                pl.BlockSpec((tile_n, z_dim), lambda i: (i, 0)),    # prior_mean
                pl.BlockSpec((tile_n, z_dim), lambda i: (i, 0)),    # prior_std
            ],
        ),
        compiler_params=pltpu.CompilerParams(
            dimension_semantics=("parallel",)),
    )(h_flat, a_flat, w_prior_h, w_prior_a, b_prior,
      w_mean, b_mean, w_std, b_std)

    return mean.reshape(B, P, z_dim), std.reshape(B, P, z_dim)


def init_params(key, h_dim, z_dim, action_encode_dim, dtype=jnp.float32):
    """Deterministic init mimicking PyTorch nn.Linear default (uniform +-1/sqrt(fan_in)).

    Weights stored [in_features, out_features]; biases [1, out_features]."""
    in_dim = h_dim + action_encode_dim
    ks = jax.random.split(key, 6)

    def lin(kw, kb, fan_in, fan_out):
        bound = 1.0 / jnp.sqrt(fan_in)
        w = jax.random.uniform(kw, (fan_in, fan_out), dtype, -bound, bound)
        b = jax.random.uniform(kb, (1, fan_out), dtype, -bound, bound)
        return w, b

    w_prior, b_prior = lin(ks[0], ks[1], in_dim, h_dim)
    w_mean, b_mean = lin(ks[2], ks[3], h_dim, z_dim)
    w_std, b_std = lin(ks[4], ks[5], h_dim, z_dim)
    return dict(w_prior=w_prior, b_prior=b_prior,
                w_mean=w_mean, b_mean=b_mean,
                w_std=w_std, b_std=b_std)


def vrnn_transition_ref(h, encoded_action, params):
    B, P, _ = h.shape
    x = jnp.concatenate([h, encoded_action], axis=2).reshape(B * P, -1)
    prior_t = jax.nn.relu(x @ params["w_prior"] + params["b_prior"])
    mean = prior_t @ params["w_mean"] + params["b_mean"]
    std = jax.nn.softplus(prior_t @ params["w_std"] + params["b_std"])
    return mean.reshape(B, P, -1), std.reshape(B, P, -1)


if __name__ == "__main__":
    # small, forward-consistent shapes
    h_dim = 32
    z_dim = 16
    action_encode_dim = 16
    batch_size, num_particles = 2, 4

    key = jax.random.PRNGKey(0)
    k_p, k_h, k_a = jax.random.split(key, 3)

    params = init_params(k_p, h_dim, z_dim, action_encode_dim)

    prev_h = jax.random.normal(
        k_h, (batch_size, num_particles, h_dim), jnp.float32)
    encoded_action = jax.random.normal(
        k_a, (batch_size, num_particles, action_encode_dim), jnp.float32)

    mean, std = vrnn_transition_pallas(prev_h, encoded_action, params)
    mean = jax.block_until_ready(mean)
    std = jax.block_until_ready(std)

    mean_ref, std_ref = vrnn_transition_ref(prev_h, encoded_action, params)
    assert mean.shape == (batch_size, num_particles, z_dim)
    assert std.shape == (batch_size, num_particles, z_dim)
    assert jnp.allclose(mean, mean_ref, atol=1e-5, rtol=1e-5), "mean mismatch"
    assert jnp.allclose(std, std_ref, atol=1e-5, rtol=1e-5), "std mismatch"

    # TODO(synk): rv.StateRandomVariable / MultivariateIndependentNormal is a
    # distribution wrapper with no Pallas equivalent; we return (mean, std) arrays.
    print("KERNEL_OK")
</pallas_src>

<mosaic_0001>
module attributes {stable_mosaic.version = 11 : i64} {
  func.func @_transition_kernel(%arg0: i32, %arg1: memref<8x32xf32, #tpu.memory_space<vmem>>, %arg2: memref<8x16xf32, #tpu.memory_space<vmem>>, %arg3: memref<32x32xf32, #tpu.memory_space<vmem>>, %arg4: memref<16x32xf32, #tpu.memory_space<vmem>>, %arg5: memref<1x32xf32, #tpu.memory_space<vmem>>, %arg6: memref<32x16xf32, #tpu.memory_space<vmem>>, %arg7: memref<1x16xf32, #tpu.memory_space<vmem>>, %arg8: memref<32x16xf32, #tpu.memory_space<vmem>>, %arg9: memref<1x16xf32, #tpu.memory_space<vmem>>, %arg10: memref<8x16xf32, #tpu.memory_space<vmem>>, %arg11: memref<8x16xf32, #tpu.memory_space<vmem>>) attributes {dimension_semantics = [#tpu.dimension_semantics<parallel>], iteration_bounds = array<i64: 1>, scalar_prefetch = 0 : i64, scratch_operands = 0 : i64, tpu.core_type = #tpu.core_type<tc>, window_params = [{transform_indices = @transform_0, window_bounds = array<i64: 8, 32>}, {transform_indices = @transform_1, window_bounds = array<i64: 8, 16>}, {pipeline_mode = #tpu.pipeline_mode<synchronous>, transform_indices = @transform_2, window_bounds = array<i64: 32, 32>}, {pipeline_mode = #tpu.pipeline_mode<synchronous>, transform_indices = @transform_3, window_bounds = array<i64: 16, 32>}, {pipeline_mode = #tpu.pipeline_mode<synchronous>, transform_indices = @transform_4, window_bounds = array<i64: 1, 32>}, {pipeline_mode = #tpu.pipeline_mode<synchronous>, transform_indices = @transform_5, window_bounds = array<i64: 32, 16>}, {pipeline_mode = #tpu.pipeline_mode<synchronous>, transform_indices = @transform_6, window_bounds = array<i64: 1, 16>}, {pipeline_mode = #tpu.pipeline_mode<synchronous>, transform_indices = @transform_7, window_bounds = array<i64: 32, 16>}, {pipeline_mode = #tpu.pipeline_mode<synchronous>, transform_indices = @transform_8, window_bounds = array<i64: 1, 16>}, {transform_indices = @transform_9, window_bounds = array<i64: 8, 16>}, {transform_indices = @transform_10, window_bounds = array<i64: 8, 16>}]} {
    %c0 = arith.constant 0 : index
    %c0_0 = arith.constant 0 : index
    %0 = vector.load %arg1[%c0, %c0_0] : memref<8x32xf32, #tpu.memory_space<vmem>>, vector<8x32xf32>
    %c0_1 = arith.constant 0 : index
    %c0_2 = arith.constant 0 : index
    %1 = vector.load %arg3[%c0_1, %c0_2] : memref<32x32xf32, #tpu.memory_space<vmem>>, vector<32x32xf32>
    %cst = arith.constant dense<0.000000e+00> : vector<8x32xf32>
    %2 = tpu.matmul %0, %1, %cst {dimension_numbers = #tpu.dot_dimension_numbers<[1], [0], [0], [1], [0, 0, 1, 1], [], []>} : vector<8x32xf32>, vector<32x32xf32>, vector<8x32xf32> -> vector<8x32xf32>
    %c0_3 = arith.constant 0 : index
    %c0_4 = arith.constant 0 : index
    %3 = vector.load %arg2[%c0_3, %c0_4] : memref<8x16xf32, #tpu.memory_space<vmem>>, vector<8x16xf32>
    %c0_5 = arith.constant 0 : index
    %c0_6 = arith.constant 0 : index
    %4 = vector.load %arg4[%c0_5, %c0_6] : memref<16x32xf32, #tpu.memory_space<vmem>>, vector<16x32xf32>
    %cst_7 = arith.constant dense<0.000000e+00> : vector<8x32xf32>
    %5 = tpu.matmul %3, %4, %cst_7 {dimension_numbers = #tpu.dot_dimension_numbers<[1], [0], [0], [1], [0, 0, 1, 1], [], []>} : vector<8x16xf32>, vector<16x32xf32>, vector<8x32xf32> -> vector<8x32xf32>
    %6 = arith.addf %2, %5 : vector<8x32xf32>
    %c0_8 = arith.constant 0 : index
    %c0_9 = arith.constant 0 : index
    %7 = vector.load %arg5[%c0_8, %c0_9] : memref<1x32xf32, #tpu.memory_space<vmem>>, vector<1x32xf32>
    %8 = vector.broadcast %7 : vector<1x32xf32> to vector<8x32xf32>
    %9 = arith.addf %6, %8 : vector<8x32xf32>
    %cst_10 = arith.constant 0.000000e+00 : f32
    %10 = vector.broadcast %cst_10 : f32 to vector<8x32xf32>
    %11 = arith.maximumf %9, %10 : vector<8x32xf32>
    %c0_11 = arith.constant 0 : index
    %c0_12 = arith.constant 0 : index
    %12 = vector.load %arg6[%c0_11, %c0_12] : memref<32x16xf32, #tpu.memory_space<vmem>>, vector<32x16xf32>
    %cst_13 = arith.constant dense<0.000000e+00> : vector<8x16xf32>
    %13 = tpu.matmul %11, %12, %cst_13 {dimension_numbers = #tpu.dot_dimension_numbers<[1], [0], [0], [1], [0, 0, 1, 1], [], []>} : vector<8x32xf32>, vector<32x16xf32>, vector<8x16xf32> -> vector<8x16xf32>
    %c0_14 = arith.constant 0 : index
    %c0_15 = arith.constant 0 : index
    %14 = vector.load %arg7[%c0_14, %c0_15] : memref<1x16xf32, #tpu.memory_space<vmem>>, vector<1x16xf32>
    %15 = vector.broadcast %14 : vector<1x16xf32> to vector<8x16xf32>
    %16 = arith.addf %13, %15 : vector<8x16xf32>
    %c0_16 = arith.constant 0 : index
    %c0_17 = arith.constant 0 : index
    %17 = vector.load %arg8[%c0_16, %c0_17] : memref<32x16xf32, #tpu.memory_space<vmem>>, vector<32x16xf32>
    %cst_18 = arith.constant dense<0.000000e+00> : vector<8x16xf32>
    %18 = tpu.matmul %11, %17, %cst_18 {dimension_numbers = #tpu.dot_dimension_numbers<[1], [0], [0], [1], [0, 0, 1, 1], [], []>} : vector<8x32xf32>, vector<32x16xf32>, vector<8x16xf32> -> vector<8x16xf32>
    %c0_19 = arith.constant 0 : index
    %c0_20 = arith.constant 0 : index
    %19 = vector.load %arg9[%c0_19, %c0_20] : memref<1x16xf32, #tpu.memory_space<vmem>>, vector<1x16xf32>
    %20 = vector.broadcast %19 : vector<1x16xf32> to vector<8x16xf32>
    %21 = arith.addf %18, %20 : vector<8x16xf32>
    %c0_21 = arith.constant 0 : index
    %c0_22 = arith.constant 0 : index
    %22 = vector.load %arg10[%c0_21, %c0_22] : memref<8x16xf32, #tpu.memory_space<vmem>>, vector<8x16xf32>
    tpu.vector_store %arg10[%c0_21, %c0_22], %16 {strides = array<i32>} : memref<8x16xf32, #tpu.memory_space<vmem>>, vector<8x16xf32>,
    %cst_23 = arith.constant 0.000000e+00 : f32
    %23 = vector.broadcast %cst_23 : f32 to vector<8x16xf32>
    %24 = arith.maximumf %21, %23 : vector<8x16xf32>
    %25 = vector.broadcast %cst_23 : f32 to vector<8x16xf32>
    %26 = arith.subf %21, %25 : vector<8x16xf32>
    %27 = arith.cmpf one, %26, %26 : vector<8x16xf32>
    %28 = vector.broadcast %cst_23 : f32 to vector<8x16xf32>
    %29 = arith.addf %21, %28 : vector<8x16xf32>
    %30 = math.absf %26 : vector<8x16xf32>
    %cst_24 = arith.constant 0.000000e+00 : f32
    %31 = vector.broadcast %cst_24 : f32 to vector<8x16xf32>
    %32 = arith.subf %31, %30 : vector<8x16xf32>
    %33 = math.exp %32 : vector<8x16xf32>
    %34 = math.log1p %33 : vector<8x16xf32>
    %35 = arith.addf %24, %34 : vector<8x16xf32>
    %36 = arith.select %27, %29, %35 : vector<8x16xi1>, vector<8x16xf32>
    %c0_25 = arith.constant 0 : index
    %c0_26 = arith.constant 0 : index
    %37 = vector.load %arg11[%c0_25, %c0_26] : memref<8x16xf32, #tpu.memory_space<vmem>>, vector<8x16xf32>
    tpu.vector_store %arg11[%c0_25, %c0_26], %36 {strides = array<i32>} : memref<8x16xf32, #tpu.memory_space<vmem>>, vector<8x16xf32>,
    return
  }
  func.func @transform_0(%arg0: i32) -> (i32, i32) {
    %c0_i32 = arith.constant 0 : i32
    %c0_i32_0 = arith.constant 0 : i32
    return %arg0, %c0_i32 : i32, i32
  }
  func.func @transform_1(%arg0: i32) -> (i32, i32) {
    %c0_i32 = arith.constant 0 : i32
    %c0_i32_0 = arith.constant 0 : i32
    return %arg0, %c0_i32 : i32, i32
  }
  func.func @transform_2(%arg0: i32) -> (i32, i32) {
    %c0_i32 = arith.constant 0 : i32
    %c0_i32_0 = arith.constant 0 : i32
    %c0_i32_1 = arith.constant 0 : i32
    return %c0_i32, %c0_i32_0 : i32, i32
  }
  func.func @transform_3(%arg0: i32) -> (i32, i32) {
    %c0_i32 = arith.constant 0 : i32
    %c0_i32_0 = arith.constant 0 : i32
    %c0_i32_1 = arith.constant 0 : i32
    return %c0_i32, %c0_i32_0 : i32, i32
  }
  func.func @transform_4(%arg0: i32) -> (i32, i32) {
    %c0_i32 = arith.constant 0 : i32
    %c0_i32_0 = arith.constant 0 : i32
    %c0_i32_1 = arith.constant 0 : i32
    return %c0_i32, %c0_i32_0 : i32, i32
  }
  func.func @transform_5(%arg0: i32) -> (i32, i32) {
    %c0_i32 = arith.constant 0 : i32
    %c0_i32_0 = arith.constant 0 : i32
    %c0_i32_1 = arith.constant 0 : i32
    return %c0_i32, %c0_i32_0 : i32, i32
  }
  func.func @transform_6(%arg0: i32) -> (i32, i32) {
    %c0_i32 = arith.constant 0 : i32
    %c0_i32_0 = arith.constant 0 : i32
    %c0_i32_1 = arith.constant 0 : i32
    return %c0_i32, %c0_i32_0 : i32, i32
  }
  func.func @transform_7(%arg0: i32) -> (i32, i32) {
    %c0_i32 = arith.constant 0 : i32
    %c0_i32_0 = arith.constant 0 : i32
    %c0_i32_1 = arith.constant 0 : i32
    return %c0_i32, %c0_i32_0 : i32, i32
  }
  func.func @transform_8(%arg0: i32) -> (i32, i32) {
    %c0_i32 = arith.constant 0 : i32
    %c0_i32_0 = arith.constant 0 : i32
    %c0_i32_1 = arith.constant 0 : i32
    return %c0_i32, %c0_i32_0 : i32, i32
  }
  func.func @transform_9(%arg0: i32) -> (i32, i32) {
    %c0_i32 = arith.constant 0 : i32
    %c0_i32_0 = arith.constant 0 : i32
    return %arg0, %c0_i32 : i32, i32
  }
  func.func @transform_10(%arg0: i32) -> (i32, i32) {
    %c0_i32 = arith.constant 0 : i32
    %c0_i32_0 = arith.constant 0 : i32
    return %arg0, %c0_i32 : i32, i32
  }
}

</mosaic_0001>

<bundles_post_ra>
// kernel: vrnn_transition_pallas.1
= control target key start
LH: loop header
LB: loop body
LE: loop exit
PB: predicated region body
PF: predicated region fallthrough
CT: control target
= control target key end

     0   :  { %16 = vsyncpa [#allocation3], 0  ;;  %v531_v2 = vmov 0.0   ;;  %s659_s0 = inlined_call_operand.vmem [shape: f32[8,32], index: 0, kind: input, shape index: {}]   ;;  %s660_s1 = inlined_call_operand.vmem [shape: f32[8,16], index: 1, kind: input, shape index: {}]   ;;  %s661_s2 = inlined_call_operand.vmem [shape: f32[32,32], index: 2, kind: input, shape index: {}]   ;;  %s662_s3 = inlined_call_operand.vmem [shape: f32[16,32], index: 3, kind: input, shape index: {}]   ;;  %s663_s4 = inlined_call_operand.vmem [shape: f32[1,32], index: 4, kind: input, shape index: {}]   ;;  %s664_s5 = inlined_call_operand.vmem [shape: f32[32,16], index: 5, kind: input, shape index: {}]   ;;  %s665_s6 = inlined_call_operand.vmem [shape: f32[1,16], index: 6, kind: input, shape index: {}]   ;;  %s666_s7 = inlined_call_operand.vmem [shape: f32[32,16], index: 7, kind: input, shape index: {}]   ;;  %s667_s8 = inlined_call_operand.vmem [shape: f32[1,16], index: 8, kind: input, shape index: {}]   ;;  %s668_s9 = inlined_call_operand.hbm [shape: f32[8,16], index: 9, kind: output, shape index: {0}]   ;;  %s669_s10 = inlined_call_operand.hbm [shape: f32[8,16], index: 10, kind: output, shape index: {1}]  }
   0x1   :  { %v40_v0 = vld [vmem:[%s661_s2 + $0x18] sm:$0xff]  ;;  %v43_v1 = vld [vmem:[%s662_s3 + $0x8] sm:$0xff]  ;;  %446 = vmatprep.subr.mxu1 %v531_v2  ;;  %439 = vmatprep.subr.mxu0 %v531_v2  ;;  %v39_v3 = vld [vmem:[%s661_s2 + $0x10] sm:$0xff] }
   0x2   :  { %v42_v4 = vld [vmem:[%s662_s3] sm:$0xff]  ;;  %447 = vmatpush3.msra.mxu1 %v40_v0  ;;  %440 = vmatpush3.msra.mxu0 %v43_v1 }
   0x3   :  { %17 = vsyncpa [#allocation5], 0  ;;  %448 = vmatprep.subr.mxu1 %v531_v2  ;;  %441 = vmatprep.subr.mxu0 %v531_v2  ;;  %v38_v5 = vld [vmem:[%s661_s2 + $0x8] sm:$0xff]  ;;  %v41_v6 = vld [vmem:[%s660_s1] sm:$0xff]  ;;  %vm44_vm0 = vcmask 130048   ;;  %vm532_vm1 = vmmov 0  }
   0x4   :  { %449 = vmatpush3.msra.mxu1 %v39_v3  ;;  %442 = vmatpush3.msra.mxu0 %v42_v4  ;;  %v37_v7 = vld [vmem:[%s661_s2] sm:$0xff]  ;;  %vm118_vm2 = vcmask 261120   ;;  %v204_v9 = vld [vmem:[%s664_s5 + $0x18] sm:$0xff]  ;;  %v203_v11 = vld [vmem:[%s664_s5 + $0x10] sm:$0xff]  ;;  %s533_s3 = smov [#allocation2]  }
   0x5   :  { %450 = vmatprep.subr.mxu1 %v531_v2  ;;  %443 = vmatprep.mubr.msk.f32.mxu0 %vm532_vm1, %v531_v2  ;;  %v36_v8 = vld [vmem:[%s659_s0] sm:$0xff]  ;;  %v288_v10 = vld [vmem:[%s666_s7 + $0x18] sm:$0xff]  ;;  %v287_v12 = vld [vmem:[%s666_s7 + $0x10] sm:$0xff]  ;;  %s392_s25 = sshll.u32 %s533_s3, 4  ;;  %s393_s25 = int_to_ptr.vmem [resolvable:$true] %s392_s25 }
   0x6   :  { %451 = vmatpush3.msra.mxu1 %v38_v5  ;;  %444 = vmatmul.mubr.msk.f32.vlgmr.msra.gmra.mxu0 %vm44_vm0, %v41_v6  ;;  %v202_v13 = vld [vmem:[%s664_s5 + $0x8] sm:$0xff]  ;;  %v201_v15 = vld [vmem:[%s664_s5] sm:$0xff]  ;;  %p492_p1 = scmp.lt.s32.totalorder %s393_s25, %s393_s25 }
   0x7   :  { %452 = vmatprep.subr.mxu1 %v531_v2  ;;  %454 = vmatprep.mubr.msk.f32.mxu1 %vm532_vm1, %v531_v2  ;;  %v286_v14 = vld [vmem:[%s666_s7 + $0x8] sm:$0xff]  ;;  %v285_v16 = vld [vmem:[%s666_s7] sm:$0xff] }
   0x8   :  { %453 = vmatpush3.msra.mxu1 %v37_v7  ;;  %457 = vmatprep.subr.mxu0 %v531_v2  ;;  %v416_v20 = vld [vmem:[%s663_s4] ss:$0 sm:$0xff]  ;;  %s487_s4 = scalar_lea.vmem %s393_s25, 128 }
   0x9   :  { %455 = vmatmul.mubr.msk.f32.vlgmr.msra.gmra.mxu1 %vm118_vm2, %v36_v8  ;;  %468 = vmatprep.subr.mxu1 %v531_v2  ;;  %v417_v25 = vld [vmem:[%s665_s6] ss:$0 sm:$0xff]  ;;  %p488_p0 = scmp.ne.s32.totalorder %s393_s25, %s487_s4  ;;  %p493_p2 = scmp.lt.s32.totalorder %s487_s4, %s487_s4 }
   0xa   :  { %465 = vmatprep.mubr.msk.f32.mxu0 %vm532_vm1, %v531_v2  ;;  %476 = vmatprep.mubr.msk.f32.mxu1 %vm532_vm1, %v531_v2  ;;  %v419_v26 = vld [vmem:[%s667_s8] ss:$0 sm:$0xff] }
   0xb   :  { %458 = vmatpush3.msra.mxu0 %v204_v9  ;;  %469 = vmatpush3.msra.mxu1 %v288_v10  ;;  %p494_p3 = por %p493_p2, %p492_p1 }
   0xc   :  { %459 = vmatprep.subr.mxu0 %v531_v2  ;;  %470 = vmatprep.subr.mxu1 %v531_v2 }
   0xd   :  { %460 = vmatpush3.msra.mxu0 %v203_v11  ;;  %471 = vmatpush3.msra.mxu1 %v287_v12  ;;  %p495_p4 = pnand %p494_p3, %p488_p0 }
   0xe   :  { %461 = vmatprep.subr.mxu0 %v531_v2  ;;  %472 = vmatprep.subr.mxu1 %v531_v2 }
   0xf   :  { %462 = vmatpush3.msra.mxu0 %v202_v13  ;;  %473 = vmatpush3.msra.mxu1 %v286_v14 }
  0x10   :  { %463 = vmatprep.subr.mxu0 %v531_v2  ;;  %474 = vmatprep.subr.mxu1 %v531_v2 }
  0x11   :  { %464 = vmatpush3.msra.mxu0 %v201_v15  ;;  %475 = vmatpush3.msra.mxu1 %v285_v16 }
  0xc6   :  { %v114_v17 = vpop.f32.mrf.mxu0 }
  0xc8   :  { %v445_v18 = vpop.f32.mrf.mxu0 }
  0xc9   :  { %v188_v19 = vpop.f32.mrf.mxu1 }
  0xca   :  { %v189_v21 = vadd.f32 %v188_v19, %v114_v17 }
  0xcb   :  { %v456_v22 = vpop.f32.mrf.mxu1 }
  0xcc   :  { %v199_v23 = vadd.f32 %v416_v20, %v189_v21 }
  0xce   :  { %v200_v24 = vmax.f32 %v199_v23, 0.0 }
  0xd0   :  { %466 = vmatmul.mubr.msk.f32.vlgmr.msra.gmra.mxu0 %vm118_vm2, %v200_v24  ;;  %477 = vmatmul.mubr.msk.f32.vlgmr.msra.gmra.mxu1 %vm118_vm2, %v200_v24 }
 0x190   :  { %v281_v27 = vpop.f32.mrf.mxu0  ;;  %v362_v28 = vpop.f32.mrf.mxu1 }
 0x191   :  { %v282_v29 = vadd.f32 %v417_v25, %v281_v27  ;;  %v363_v30 = vadd.f32 %v419_v26, %v362_v28 }
 0x192   :  { %v467_v31 = vpop.f32.mrf.mxu0  ;;  %v478_v32 = vpop.f32.mrf.mxu1 }
 0x193   :  { %366 = vst.msk [vmem:[#allocation2] sm:$0xff] %vm44_vm0, %v282_v29  ;;  %v370_v33 = vand.u32 2147483647, %v363_v30 }
 0x194   :  { %498 = shalt.err (!%p495_p4)
}
 0x195   :  { %395 = dma.vmem_to_hbm [thread:$0]  %s393_s25, 128, %s668_s9, [#allocation3]   ;;  %v371_v34 = vsub.f32 0.0, %v370_v33  ;;  %v367_v44 = vmax.f32 %v363_v30, 0.0  ;;  %vm368_vm4 = vcmp.ne.f32.partialorder %v363_v30, %v363_v30 }
 0x196   :  { %s534_s26 = smov [#allocation4]  }
 0x197   :  { %v372_v35 = vmul.f32 1.442695, %v371_v34  ;;  %s402_s27 = sshll.u32 %s534_s26, 4  ;;  %s403_s27 = int_to_ptr.vmem [resolvable:$true] %s402_s27 }
 0x198   :  { %s507_s9 = scalar_lea.vmem %s403_s27, 128  ;;  %p512_p6 = scmp.lt.s32.totalorder %s403_s27, %s403_s27 }
 0x199   :  { %483 = vpow2.f32 %v372_v35  ;;  %p508_p5 = scmp.ne.s32.totalorder %s403_s27, %s507_s9  ;;  %p513_p7 = scmp.lt.s32.totalorder %s507_s9, %s507_s9 }
 0x19b   :  { %p514_p8 = por %p513_p7, %p512_p6 }
 0x19d   :  { %p515_p9 = pnand %p514_p8, %p508_p5 }
 0x1a6   :  { %v484_v36 = vpop.eup %483 }
 0x1a7   :  { %v374_v37 = vadd.f32 1.0, %v484_v36  ;;  %v377_v38 = vmul.f32 -0.5, %v484_v36  ;;  %v380_v40 = vand.u32 2147483647, %v484_v36 }
 0x1a9   :  { %485 = vlog2.f32 %v374_v37  ;;  %v378_v39 = vadd.f32 1.0, %v377_v38  ;;  %vm381_vm3 = vcmp.lt.f32.partialorder %v380_v40, 0.0004427343 }
 0x1ab   :  { %v379_v43 = vmul.f32 %v484_v36, %v378_v39 }
 0x1b6   :  { %v486_v41 = vpop.eup %485 }
 0x1b7   :  { %v376_v42 = vmul.f32 0.6931472, %v486_v41 }
 0x1b9   :  { %v382_v45 = vsel %vm381_vm3, %v379_v43, %v376_v42 }
 0x1ba   :  { %v383_v46 = vadd.f32 %v382_v45, %v367_v44 }
 0x1bc   :  { %v384_v47 = vsel %vm368_vm4, %v363_v30, %v383_v46 }
 0x1bd   :  { %385 = vst.msk [vmem:[#allocation4] sm:$0xff] %vm44_vm0, %v384_v47 }
 0x1be   :  { %518 = shalt.err (!%p515_p9)
}
 0x1bf   :  { %405 = dma.vmem_to_hbm [thread:$0]  %s403_s27, 128, %s669_s10, [#allocation5]  }
 0x1c0   :  { %527 = dma.done.wait [#allocation3], 128  }
 0x1c1   :  { %528 = vsyncadd [#allocation3], 4294967168 }
 0x1c2   :  { %529 = dma.done.wait [#allocation5], 128  }
 0x1c3   :  { %530 = vsyncadd [#allocation5], 4294967168 }
 0x1c4   :  { %412 = vsyncpa [#allocation3], 1 }
 0x1c5   :  { %413 = vsyncpa [#allocation5], 1 }

</bundles_post_ra>
